<compile_context>
chip_gen: v7x
topology: tpu7x:2x2x1
jax: 0.10.0
libtpu: 0.0.40
codegen_flags: <defaults>
</compile_context>

<pallas_src>
import functools

import jax
import jax.numpy as jnp
from jax.experimental import pallas as pl
from jax.experimental.pallas import tpu as pltpu


# ----------------------------------------------------------------------------
# Fused upsample kernel: two matmuls, everything stays in VMEM.
# ----------------------------------------------------------------------------
def _upsample_kernel(x_ref, mhw_ref, md_ref, o_ref):
    bc, d, hw = x_ref.shape          # channel tile, input depth, H*W
    do = md_ref.shape[1]             # output depth
    howo = mhw_ref.shape[1]          # Ho*Wo (lane-dense)

    # Stage 1: fused H/W interpolation -- one lane-dense 2-D MXU matmul.
    x2 = x_ref[...].reshape(bc * d, hw)
    t = jnp.dot(x2, mhw_ref[...], preferred_element_type=jnp.float32)

    # Stage 2: D interpolation as a batched matmul over the channel tile
    # (contraction length is just D -- no block-diagonal redundancy).
    t3 = t.reshape(bc, d, howo).astype(x_ref.dtype)
    y = jax.lax.dot_general(
        md_ref[...], t3,
        dimension_numbers=(((2,), (1,)), ((0,), (0,))),
        preferred_element_type=jnp.float32)            # (bc, Do, HoWo)

    o_ref[...] = y.astype(o_ref.dtype)


# ----------------------------------------------------------------------------
# 1-D linear interpolation matrix (align_corners=True semantics)
# ----------------------------------------------------------------------------
def interp_matrix(in_size: int, out_size: int) -> jnp.ndarray:
    """Returns M of shape (out_size, in_size) with y = M @ x along that axis."""
    j = jnp.arange(out_size, dtype=jnp.float32)
    if out_size > 1:
        src = j * (in_size - 1) / (out_size - 1)
    else:
        src = jnp.zeros_like(j)
    i0 = jnp.clip(jnp.floor(src).astype(jnp.int32), 0, in_size - 1)
    i1 = jnp.minimum(i0 + 1, in_size - 1)
    w1 = src - i0.astype(jnp.float32)
    w0 = 1.0 - w1
    oh0 = jax.nn.one_hot(i0, in_size, dtype=jnp.float32)
    oh1 = jax.nn.one_hot(i1, in_size, dtype=jnp.float32)
    return w0[:, None] * oh0 + w1[:, None] * oh1


# ----------------------------------------------------------------------------
# Generation-aware VMEM capacity
# ----------------------------------------------------------------------------
def _vmem_capacity_bytes() -> int:
    try:
        return int(pltpu.get_tpu_info().vmem_capacity_bytes)
    except Exception:
        return 64 * 1024 * 1024   # conservative (v7x per-TC capacity)


# ----------------------------------------------------------------------------
# Tile-size selection.
#   * always leaves >= 2 grid steps (v7x: both TensorCores busy),
#   * counts double-buffering of ALL operands + f32 intermediates,
#   * prefers the largest fitting tile (HBM-writeback bound kernel),
#     with mild bonuses for 128-aligned rows and an even step count.
# ----------------------------------------------------------------------------
def _choose_block_nc(nc, d, hw, do, howo, itemsize, budget) -> int:
    def step_vmem(bc):
        x_buf = 2 * bc * d * hw * itemsize            # input tile (dbl-buffered)
        o_buf = 2 * bc * do * howo * itemsize         # output tile (dbl-buffered)
        mhw_buf = 2 * hw * howo * itemsize            # resident Kron matrix
        md_buf = 2 * bc * do * d * itemsize           # broadcast D-matrix
        scratch = bc * d * howo * (4 + itemsize)      # f32 stage-1 result + cast
        scratch += bc * do * howo * 4                 # f32 stage-2 result
        return x_buf + o_buf + mhw_buf + md_buf + scratch

    if nc <= 1:
        return 1
    max_bc = max(1, nc // 2)   # >= 2 grid steps
    divisors = [b for b in range(1, max_bc + 1) if nc % b == 0]
    fitting = [b for b in divisors if step_vmem(b) <= budget]
    if not fitting:
        return divisors[0]     # smallest divisor => smallest buffers

    def score(b):
        s = float(b)                        # primary: biggest output slab
        if (b * d) % 128 == 0:
            s *= 1.08                       # whole MXU passes / vreg rows
        elif (b * d) % 8 == 0:
            s *= 1.04
        if (nc // b) % 2 == 0:
            s *= 1.04                       # even step count -> balanced TCs
        return s

    return max(fitting, key=score)


# ----------------------------------------------------------------------------
# Upsample forward (trilinear, scale_factor=2.0, align_corners=True)
# ----------------------------------------------------------------------------
@functools.partial(jax.jit, static_argnames=("block_nc",))
def upsample_trilinear_x2(x, block_nc=None):
    """x: (N, C, D, H, W) -> (N, C, 2D, 2H, 2W), same dtype as x."""
    N, C, D, H, W = x.shape
    Do, Ho, Wo = 2 * D, 2 * H, 2 * W
    NC, HW, HoWo = N * C, H * W, Ho * Wo
    dtype = x.dtype
    itemsize = dtype.itemsize

    vmem_cap = _vmem_capacity_bytes()
    budget = (vmem_cap * 5) // 8                       # 40 MiB on v7x, 80 MiB on v5e/v6e
    vmem_limit = int(min((vmem_cap * 3) // 4, 96 * 1024 * 1024))

    bc = block_nc if block_nc is not None else _choose_block_nc(
        NC, D, HW, Do, HoWo, itemsize, budget)
    if NC % bc != 0:
        raise ValueError(f"block_nc={bc} must divide N*C={NC}")

    # Interpolation matrices (built once; tiny), in the input dtype.
    Mw = interp_matrix(W, Wo)                                   # (Wo, W)
    Mh = interp_matrix(H, Ho)                                   # (Ho, H)
    Md = interp_matrix(D, Do)                                   # (Do, D)
    mhw_t = jnp.kron(Mh, Mw).T.astype(dtype)                    # (HW, HoWo)
    md_b = jnp.broadcast_to(Md.astype(dtype)[None], (bc, Do, D))  # (bc, Do, D)

    # Pure-metadata reshape: flatten batch*channel and H*W.
    x3 = x.reshape(NC, D, HW)

    grid = (NC // bc,)
    cost = pl.CostEstimate(
        flops=2 * NC * D * HW * HoWo + 2 * NC * Do * D * HoWo,
        transcendentals=0,
        bytes_accessed=(NC * D * HW + NC * Do * HoWo + HW * HoWo
                        + bc * Do * D) * itemsize,
    )

    out = pl.pallas_call(
        _upsample_kernel,
        out_shape=jax.ShapeDtypeStruct((NC, Do, HoWo), dtype),
        grid=grid,
        in_specs=[
            pl.BlockSpec((bc, D, HW), lambda i: (i, 0, 0)),     # input tile
            pl.BlockSpec((HW, HoWo), lambda i: (0, 0)),         # Mhw^T (resident)
            pl.BlockSpec((bc, Do, D), lambda i: (0, 0, 0)),     # Md (broadcast)
        ],
        out_specs=pl.BlockSpec((bc, Do, HoWo), lambda i: (i, 0, 0)),
        compiler_params=pltpu.CompilerParams(
            dimension_semantics=("parallel",),
            vmem_limit_bytes=vmem_limit,
        ),
        cost_estimate=cost,
    )(x3, mhw_t, md_b)

    return out.reshape(N, C, Do, Ho, Wo)


# ----------------------------------------------------------------------------
# Pure-JAX reference (direct gather + lerp, align_corners=True)
# ----------------------------------------------------------------------------
def _ref_axis_lerp(x, axis, out_size):
    in_size = x.shape[axis]
    j = jnp.arange(out_size, dtype=jnp.float32)
    if out_size > 1:
        src = j * (in_size - 1) / (out_size - 1)
    else:
        src = jnp.zeros_like(j)
    i0 = jnp.clip(jnp.floor(src).astype(jnp.int32), 0, in_size - 1)
    i1 = jnp.minimum(i0 + 1, in_size - 1)
    w1 = src - i0.astype(jnp.float32)
    w0 = 1.0 - w1
    x0 = jnp.take(x, i0, axis=axis)
    x1 = jnp.take(x, i1, axis=axis)
    shape = [1] * x.ndim
    shape[axis] = out_size
    return x0 * w0.reshape(shape) + x1 * w1.reshape(shape)


def ref_upsample_trilinear_x2(x):
    y = _ref_axis_lerp(x, 4, 2 * x.shape[4])
    y = _ref_axis_lerp(y, 3, 2 * x.shape[3])
    y = _ref_axis_lerp(y, 2, 2 * x.shape[2])
    return y


# TODO(synk): the `type='conv'` branch (nn.ConvTranspose3d) of Upsample is not
# implemented; the default module uses the interpolation branch translated here.

if __name__ == "__main__":
    key = jax.random.PRNGKey(0)
    k0, k1 = jax.random.split(key)

    # Main shape (module default path: trilinear x2, align_corners=True).
    N, C, D, H, W = 2, 4, 8, 8, 8
    x = jax.random.normal(k0, (N, C, D, H, W), dtype=jnp.float32)
    y_ref = ref_upsample_trilinear_x2(x)

    # Default tiling (chooser keeps >= 2 grid steps).
    y = jax.block_until_ready(upsample_trilinear_x2(x))
    assert y.shape == (N, C, 2 * D, 2 * H, 2 * W), y.shape
    assert y.dtype == x.dtype, y.dtype
    err = float(jnp.max(jnp.abs(y - y_ref)))
    assert err < 1e-4, err

    # Forced smaller tile -> 4 grid steps, exercising the pipelined path.
    y2 = jax.block_until_ready(upsample_trilinear_x2(x, block_nc=2))
    err2 = float(jnp.max(jnp.abs(y2 - y_ref)))
    assert err2 < 1e-4, err2

    # Non-cubic shape (exercises general interpolation weights / tiling).
    xb = jax.random.normal(k1, (1, 2, 4, 8, 16), dtype=jnp.float32)
    yb = jax.block_until_ready(upsample_trilinear_x2(xb))
    yb_ref = ref_upsample_trilinear_x2(xb)
    assert yb.shape == (1, 2, 8, 16, 32), yb.shape
    errb = float(jnp.max(jnp.abs(yb - yb_ref)))
    assert errb < 1e-4, errb

    print("KERNEL_OK")
</pallas_src>

<mosaic_0001>
module attributes {stable_mosaic.version = 11 : i64} {
  func.func @_upsample_kernel(%arg0: i32, %arg1: memref<4x8x64xf32, #tpu.memory_space<vmem>>, %arg2: memref<64x256xf32, #tpu.memory_space<vmem>>, %arg3: memref<4x16x8xf32, #tpu.memory_space<vmem>>, %arg4: memref<4x16x256xf32, #tpu.memory_space<vmem>>) attributes {dimension_semantics = [#tpu.dimension_semantics<parallel>], iteration_bounds = array<i64: 2>, scalar_prefetch = 0 : i64, scratch_operands = 0 : i64, tpu.core_type = #tpu.core_type<tc>, window_params = [{transform_indices = @transform_0, window_bounds = array<i64: 4, 8, 64>}, {pipeline_mode = #tpu.pipeline_mode<synchronous>, transform_indices = @transform_1, window_bounds = array<i64: 64, 256>}, {pipeline_mode = #tpu.pipeline_mode<synchronous>, transform_indices = @transform_2, window_bounds = array<i64: 4, 16, 8>}, {transform_indices = @transform_3, window_bounds = array<i64: 4, 16, 256>}]} {
    %c0 = arith.constant 0 : index
    %c0_0 = arith.constant 0 : index
    %c0_1 = arith.constant 0 : index
    %0 = vector.load %arg1[%c0, %c0_0, %c0_1] : memref<4x8x64xf32, #tpu.memory_space<vmem>>, vector<4x8x64xf32>
    %1 = vector.shape_cast %0 : vector<4x8x64xf32> to vector<32x64xf32>
    %c0_2 = arith.constant 0 : index
    %c0_3 = arith.constant 0 : index
    %2 = vector.load %arg2[%c0_2, %c0_3] : memref<64x256xf32, #tpu.memory_space<vmem>>, vector<64x256xf32>
    %cst = arith.constant dense<0.000000e+00> : vector<32x256xf32>
    %3 = tpu.matmul %1, %2, %cst {dimension_numbers = #tpu.dot_dimension_numbers<[1], [0], [0], [1], [0, 0, 1, 1], [], []>} : vector<32x64xf32>, vector<64x256xf32>, vector<32x256xf32> -> vector<32x256xf32>
    %4 = vector.shape_cast %3 : vector<32x256xf32> to vector<4x8x256xf32>
    %c0_4 = arith.constant 0 : index
    %c0_5 = arith.constant 0 : index
    %c0_6 = arith.constant 0 : index
    %5 = vector.load %arg3[%c0_4, %c0_5, %c0_6] : memref<4x16x8xf32, #tpu.memory_space<vmem>>, vector<4x16x8xf32>
    %cst_7 = arith.constant dense<0.000000e+00> : vector<4x16x256xf32>
    %6 = tpu.matmul %5, %4, %cst_7 {dimension_numbers = #tpu.dot_dimension_numbers<[2], [1], [1], [2], [0, 0, 0, 1, 1, 2], [0], [0]>} : vector<4x16x8xf32>, vector<4x8x256xf32>, vector<4x16x256xf32> -> vector<4x16x256xf32>
    %c0_8 = arith.constant 0 : index
    %c0_9 = arith.constant 0 : index
    %c0_10 = arith.constant 0 : index
    %7 = vector.load %arg4[%c0_8, %c0_9, %c0_10] : memref<4x16x256xf32, #tpu.memory_space<vmem>>, vector<4x16x256xf32>
    tpu.vector_store %arg4[%c0_8, %c0_9, %c0_10], %6 {strides = array<i32>} : memref<4x16x256xf32, #tpu.memory_space<vmem>>, vector<4x16x256xf32>,
    return
  }
  func.func @transform_0(%arg0: i32) -> (i32, i32, i32) {
    %c0_i32 = arith.constant 0 : i32
    %c0_i32_0 = arith.constant 0 : i32
    %c0_i32_1 = arith.constant 0 : i32
    return %arg0, %c0_i32, %c0_i32_0 : i32, i32, i32
  }
  func.func @transform_1(%arg0: i32) -> (i32, i32) {
    %c0_i32 = arith.constant 0 : i32
    %c0_i32_0 = arith.constant 0 : i32
    %c0_i32_1 = arith.constant 0 : i32
    return %c0_i32, %c0_i32_0 : i32, i32
  }
  func.func @transform_2(%arg0: i32) -> (i32, i32, i32) {
    %c0_i32 = arith.constant 0 : i32
    %c0_i32_0 = arith.constant 0 : i32
    %c0_i32_1 = arith.constant 0 : i32
    %c0_i32_2 = arith.constant 0 : i32
    return %c0_i32, %c0_i32_0, %c0_i32_1 : i32, i32, i32
  }
  func.func @transform_3(%arg0: i32) -> (i32, i32, i32) {
    %c0_i32 = arith.constant 0 : i32
    %c0_i32_0 = arith.constant 0 : i32
    %c0_i32_1 = arith.constant 0 : i32
    return %arg0, %c0_i32, %c0_i32_0 : i32, i32, i32
  }
}

</mosaic_0001>

<bundles_post_ra>
// kernel: upsample_trilinear_x2.1
= control target key start
LH: loop header
LB: loop body
LE: loop exit
PB: predicated region body
PF: predicated region fallthrough
CT: control target
= control target key end

     0   :  { %s792_s12 = smov 0   ;;  %s923_s0 = inlined_call_operand.vmem [shape: f32[8,8,64], index: 0, kind: input, shape index: {}]   ;;  %s924_s1 = inlined_call_operand.vmem [shape: f32[64,256], index: 1, kind: input, shape index: {}]   ;;  %s925_s2 = inlined_call_operand.vmem [shape: f32[4,16,8], index: 2, kind: input, shape index: {}]   ;;  %s926_s3 = inlined_call_operand.vmem [shape: f32[8,16,256], index: 3, kind: output, shape index: {}]  }
   0x1 LB: > { %s713_s13 = sadd.s32 4294967295, %s769_s12   ;;  %p717_p0 = scmp.ge.s32.totalorder %s769_s12, 1  ;;  %s769_s12 = sphi %s792_s12, %s13_s12  }
   0x2   : > { %p138_p1 = scmp.lt.s32.totalorder %s769_s12, 3 }
   0x4   : > { %p139_p2 = pnand %p717_p0, %p138_p1 }
   0x5   : > { %v181_v0 = vld [vmem:[%s924_s1 + $0x8] sm:$0xff] (!%p139_p2)  ;;  %v183_v1 = vld [vmem:[%s924_s1 + $0x18] sm:$0xff] (!%p139_p2)  ;;  %v180_v2 = vld [vmem:[%s924_s1] sm:$0xff] (!%p139_p2)  ;;  %s718_s20 = sshll.u32 (!%p139_p2), %s713_s13, 2  ;;  %v771_v7 = vmov (!%p139_p2), 0.0   ;;  %vm196_vm0 = vcmask (!%p139_p2), 523264  }
   0x6   : > { %142 = sbr.rel (%p139_p2) target bundleno = 481 (0x1e1), region = 32  ;;  %v738_v3 = vpack.c.bf16 (!%p139_p2), %v183_v1, %v181_v0  ;;  %v182_v4 = vld [vmem:[%s924_s1 + $0x10] sm:$0xff] (!%p139_p2)  ;;  %v185_v5 = vld [vmem:[%s924_s1 + $0x28] sm:$0xff] (!%p139_p2)  ;;  %v187_v6 = vld [vmem:[%s924_s1 + $0x38] sm:$0xff] (!%p139_p2)  ;;  %273 = vmatprep.mubr.f32.mxu0 (!%p139_p2), %v771_v7  ;;  %377 = vmatprep.mubr.f32.mxu1 (!%p139_p2), %v771_v7  ;;  %p164_p3 = scmp.lt.s32.totalorder (!%p139_p2), %s718_s20, 7  ;;  %vm306_vm1 = vcmask (!%p139_p2), 64512  }
   0x7   : > { %v740_v8 = vpack.c.bf16 (!%p139_p2), %v182_v4, %v180_v2  ;;  %v742_v9 = vpack.c.bf16 (!%p139_p2), %v187_v6, %v185_v5  ;;  %v184_v10 = vld [vmem:[%s924_s1 + $0x20] sm:$0xff] (!%p139_p2)  ;;  %v186_v11 = vld [vmem:[%s924_s1 + $0x30] sm:$0xff] (!%p139_p2)  ;;  %v189_v12 = vld [vmem:[%s924_s1 + $0x48] sm:$0xff] (!%p139_p2) }
   0x8   : > { %739 = vmatprep.subr.bf16.mxu0 (!%p139_p2), %v738_v3  ;;  %v191_v13 = vld [vmem:[%s924_s1 + $0x58] sm:$0xff] (!%p139_p2)  ;;  %v744_v14 = vpack.c.bf16 (!%p139_p2), %v186_v11, %v184_v10  ;;  %v188_v16 = vld [vmem:[%s924_s1 + $0x40] sm:$0xff] (!%p139_p2)  ;;  %v190_v17 = vld [vmem:[%s924_s1 + $0x50] sm:$0xff] (!%p139_p2) }
   0x9   : > { %741 = vmatpush1.bf16.msra.mxu0 (!%p139_p2), %v740_v8  ;;  %v746_v15 = vpack.c.bf16 (!%p139_p2), %v191_v13, %v189_v12  ;;  %v193_v18 = vld [vmem:[%s924_s1 + $0x68] sm:$0xff] (!%p139_p2)  ;;  %v195_v19 = vld [vmem:[%s924_s1 + $0x78] sm:$0xff] (!%p139_p2)  ;;  %v748_v20 = vpack.c.bf16 (!%p139_p2), %v190_v17, %v188_v16  ;;  %v192_v22 = vld [vmem:[%s924_s1 + $0x60] sm:$0xff] (!%p139_p2) }
   0xa   : > { %743 = vmatprep.subr.bf16.mxu0 (!%p139_p2), %v742_v9  ;;  %v750_v21 = vpack.c.bf16 (!%p139_p2), %v195_v19, %v193_v18  ;;  %v194_v23 = vld [vmem:[%s924_s1 + $0x70] sm:$0xff] (!%p139_p2)  ;;  %v298_v31 = vld [vmem:[%s925_s2] sm:$0xff] (!%p139_p2)  ;;  %v299_v34 = vld [vmem:[%s925_s2 + $0x8] sm:$0xff] (!%p139_p2) }
   0xb   : > { %v752_v24 = vpack.c.bf16 (!%p139_p2), %v194_v23, %v192_v22  ;;  %v300_v37 = vld [vmem:[%s925_s2 + $0x10] sm:$0xff] (!%p139_p2)  ;;  %v301_v39 = vld [vmem:[%s925_s2 + $0x18] sm:$0xff] (!%p139_p2)  ;;  %v302_v41 = vld [vmem:[%s925_s2 + $0x20] sm:$0xff] (!%p139_p2) }
   0xc   : > { %v303_v42 = vld [vmem:[%s925_s2 + $0x28] sm:$0xff] (!%p139_p2)  ;;  %v304_v43 = vld [vmem:[%s925_s2 + $0x30] sm:$0xff] (!%p139_p2)  ;;  %v305_v44 = vld [vmem:[%s925_s2 + $0x38] sm:$0xff] (!%p139_p2) }
   0xd   : > { %s928_s20 = smov (!%p164_p3, %s718_s20), 7  ;;  %745 = vmatpush1.bf16.msra.mxu0 %v744_v14 }
   0xe   : > { %747 = vmatprep.subr.bf16.mxu0 %v746_v15  ;;  %s719_s22 = sshll.u32 %s928_s20, 3  ;;  %s737_s16 = sshll.u32 %s928_s20, 5 }
   0xf   : > { %s167_s25 = scalar_lea.vmem %s923_s0, %s719_s22  ;;  %s902_s19 = scalar_lea.vmem %s926_s3, %s737_s16 }
  0x10   : > { %v176_v25 = vld [vmem:[%s167_s25] sm:$0xff]  ;;  %v177_v26 = vld [vmem:[%s167_s25 + $0x8] sm:$0xff]  ;;  %v178_v27 = vld [vmem:[%s167_s25 + $0x10] sm:$0xff] }
  0x11   : > { %749 = vmatpush1.bf16.msra.mxu0 %v748_v20  ;;  %v179_v28 = vld [vmem:[%s167_s25 + $0x18] sm:$0xff] }
  0x12   : > { %751 = vmatprep.subr.bf16.mxu0 %v750_v21 }
  0x15   : > { %753 = vmatpush1.bf16.msra.mxu0 %v752_v24 }
  0x18   : > { %723 = vmatmul.mubr.msk.f32.vlgmr.msra.gmra.mrb[0].mxu0 %vm196_vm0, %v176_v25 }
  0x19   : > { %279 = vmatprep.mubr.f32.mxu0 %v771_v7 }
  0x1c   : > { %724 = vmatmul.mubr.msk.f32.gmra.mrb[2].mxu0 %vm196_vm0, %v177_v26 }
  0x1d   : > { %285 = vmatprep.mubr.f32.mxu0 %v771_v7 }
  0x20   : > { %725 = vmatmul.mubr.msk.f32.gmra.mrb[4].mxu0 %vm196_vm0, %v178_v27 }
  0x21   : > { %291 = vmatprep.mubr.f32.mxu0 %v771_v7 }
  0x24   : > { %726 = vmatmul.mubr.msk.f32.gmra.mrb[6].mxu0 %vm196_vm0, %v179_v28 }
  0xeb   : > { %v275_v29 = vpop.f32.mrb[0].mxu0 }
  0xec   : > { %v277_v30 = vpop.f32.mrb[1].mxu0 }
  0xed   : > { %313 = vmatprep.subr.mxu1 %v277_v30 }
  0xee   : > { %314 = vmatpush1.msra.mxu1 %v275_v29 }
  0xef   : > { %v281_v32 = vpop.f32.mrb[2].mxu0  ;;  %727 = vmatmul.mubr.msk.f32.vlgmr.msra.gmra.mrb[0].mxu1 %vm306_vm1, %v298_v31 }
  0xf0   : > { %v283_v33 = vpop.f32.mrb[3].mxu0  ;;  %383 = vmatprep.mubr.f32.mxu1 %v771_v7 }
  0xf1   : > { %396 = vmatprep.subr.mxu1 %v283_v33 }
  0xf2   : > { %397 = vmatpush1.msra.mxu1 %v281_v32 }
  0xf3   : > { %728 = vmatmul.mubr.msk.f32.gmra.mrb[2].mxu1 %vm306_vm1, %v299_v34  ;;  %v287_v35 = vpop.f32.mrb[4].mxu0 }
  0xf4   : > { %v289_v36 = vpop.f32.mrb[5].mxu0  ;;  %460 = vmatprep.mubr.f32.mxu1 %v771_v7 }
  0xf5   : > { %479 = vmatprep.subr.mxu1 %v289_v36 }
  0xf7   : > { %729 = vmatmul.mubr.msk.f32.vlgmr.msra.gmra.mrb[4].mxu1 %vm306_vm1, %v300_v37  ;;  %v293_v38 = vpop.f32.mrb[6].mxu0 }
  0xf8   : > { %480 = vmatpush1.msra.mxu1 %v287_v35  ;;  %466 = vmatprep.mubr.f32.mxu1 %v771_v7  ;;  %v295_v40 = vpop.f32.mrb[7].mxu0 }
  0xf9   : > { %562 = vmatprep.subr.mxu1 %v295_v40 }
  0xfb   : > { %730 = vmatmul.mubr.msk.f32.gmra.mrb[6].mxu1 %vm306_vm1, %v301_v39 }
  0xfc   : > { %543 = vmatprep.mubr.f32.mxu1 %v771_v7 }
  0xff   : > { %731 = vmatmul.mubr.msk.f32.vlgmr.msra.gmra.mrb[8].mxu1 %vm306_vm1, %v302_v41 }
 0x100   : > { %563 = vmatpush1.msra.mxu1 %v293_v38  ;;  %549 = vmatprep.mubr.f32.mxu1 %v771_v7 }
 0x103   : > { %732 = vmatmul.mubr.msk.f32.gmra.mrb[10].mxu1 %vm306_vm1, %v303_v42 }
 0x104   : > { %626 = vmatprep.mubr.f32.mxu1 %v771_v7 }
 0x107   : > { %733 = vmatmul.mubr.msk.f32.vlgmr.msra.gmra.mrb[12].mxu1 %vm306_vm1, %v304_v43 }
 0x108   : > { %632 = vmatprep.mubr.f32.mxu1 %v771_v7 }
 0x10b   : > { %734 = vmatmul.mubr.msk.f32.gmra.mrb[14].mxu1 %vm306_vm1, %v305_v44 }
 0x1c2   : > { %v379_v45 = vpop.f32.mrb[0].mxu1 }
 0x1c3   : > { %639 = vst [vmem:[%s902_s19] sm:$0xff] %v379_v45  ;;  %v381_v46 = vpop.f32.mrb[1].mxu1 }
 0x1c4   : > { %640 = vst [vmem:[%s902_s19 + $0x8] sm:$0xff] %v381_v46 }
 0x1c6   : > { %v385_v47 = vpop.f32.mrb[2].mxu1 }
 0x1c7   : > { %641 = vst [vmem:[%s902_s19 + $0x10] sm:$0xff] %v385_v47  ;;  %v387_v48 = vpop.f32.mrb[3].mxu1 }
 0x1c8   : > { %642 = vst [vmem:[%s902_s19 + $0x18] sm:$0xff] %v387_v48 }
 0x1ca   : > { %v462_v49 = vpop.f32.mrb[4].mxu1 }
 0x1cb   : > { %643 = vst [vmem:[%s902_s19 + $0x20] sm:$0xff] %v462_v49  ;;  %v464_v50 = vpop.f32.mrb[5].mxu1 }
 0x1cc   : > { %644 = vst [vmem:[%s902_s19 + $0x28] sm:$0xff] %v464_v50 }
 0x1ce   : > { %v468_v51 = vpop.f32.mrb[6].mxu1 }
 0x1cf   : > { %645 = vst [vmem:[%s902_s19 + $0x30] sm:$0xff] %v468_v51  ;;  %v470_v52 = vpop.f32.mrb[7].mxu1 }
 0x1d0   : > { %646 = vst [vmem:[%s902_s19 + $0x38] sm:$0xff] %v470_v52 }
 0x1d2   : > { %v545_v53 = vpop.f32.mrb[8].mxu1 }
 0x1d3   : > { %647 = vst [vmem:[%s902_s19 + $0x40] sm:$0xff] %v545_v53  ;;  %v547_v54 = vpop.f32.mrb[9].mxu1 }
 0x1d4   : > { %648 = vst [vmem:[%s902_s19 + $0x48] sm:$0xff] %v547_v54 }
 0x1d6   : > { %v551_v55 = vpop.f32.mrb[10].mxu1 }
 0x1d7   : > { %649 = vst [vmem:[%s902_s19 + $0x50] sm:$0xff] %v551_v55  ;;  %v553_v56 = vpop.f32.mrb[11].mxu1 }
 0x1d8   : > { %650 = vst [vmem:[%s902_s19 + $0x58] sm:$0xff] %v553_v56 }
 0x1da   : > { %v628_v57 = vpop.f32.mrb[12].mxu1 }
 0x1db   : > { %651 = vst [vmem:[%s902_s19 + $0x60] sm:$0xff] %v628_v57  ;;  %v630_v58 = vpop.f32.mrb[13].mxu1 }
 0x1dc   : > { %652 = vst [vmem:[%s902_s19 + $0x68] sm:$0xff] %v630_v58 }
 0x1de   : > { %v634_v59 = vpop.f32.mrb[14].mxu1 }
 0x1df   : > { %653 = vst [vmem:[%s902_s19 + $0x70] sm:$0xff] %v634_v59  ;;  %v636_v60 = vpop.f32.mrb[15].mxu1 }
 0x1e0   : > { %654 = vst [vmem:[%s902_s19 + $0x78] sm:$0xff] %v636_v60 }
 0x1e1 PF: > { %s13_s12 = sadd.s32 1, %s769_s12  }
 0x1e2   : > { %p10_p4 = scmp.ge.s32.totalorder %s13_s12, 4  }
 0x1e4   :  { %12 = sbr.rel (!%p10_p4) target bundleno = 1 (0x1), region = 62 }

</bundles_post_ra>
